<compile_context>
chip_gen: v7x
topology: tpu7x:2x2x1
jax: 0.10.0
libtpu: 0.0.40
codegen_flags: <defaults>
</compile_context>

<pallas_src>
import functools
import math

import jax
import jax.numpy as jnp
from jax import lax
from jax.experimental import pallas as pl
from jax.experimental.pallas import tpu as pltpu

_LANES = 128
_SUBLANES = 8


# ---------------------------------------------------------------------------
# Kernel: per-batch partial sums over a lane-dense (B, r, 128) view.
# ---------------------------------------------------------------------------
def _iou_partials_kernel(pred_ref, tgt_ref, out_ref, acc_prod, acc_sum, *,
                         rows_total, rows_tile, k_per_split, batch_tile,
                         any_ragged):
    """Accumulate per-batch IoU partial sums.

    pred_ref / tgt_ref : (batch_tile, rows_tile, 128) input tile.
    out_ref            : (batch_tile, 2, 128) lane-partials of [sum(p*t), sum(p+t)].
    acc_prod / acc_sum : (batch_tile, 8, 128) f32 VMEM accumulators, resident
                         across the k (row-tile) grid axis.
    """
    si = pl.program_id(1)      # row-split index (parallel)
    k = pl.program_id(2)       # row-tile index within the split (arbitrary)

    @pl.when(k == 0)
    def _():
        acc_prod[...] = jnp.zeros_like(acc_prod)
        acc_sum[...] = jnp.zeros_like(acc_sum)

    full = (rows_tile // _SUBLANES) * _SUBLANES    # compile-time ints
    tail = rows_tile - full

    def fold_into(acc_ref, x):
        # Fold rows into the (batch_tile, 8, 128) accumulator with pure
        # vreg-wise VPU adds (no XLU cross-lane reduce in the steady state).
        if full > 0:
            acc_ref[...] += jnp.sum(
                x[:, :full, :].reshape(batch_tile, full // _SUBLANES,
                                       _SUBLANES, _LANES),
                axis=1)
        if tail > 0:
            acc_ref[:, :tail, :] += x[:, full:, :]

    def accumulate(p, t):
        # Only two partials: intersection and sum(p)+sum(t).  The union is
        # recovered in the epilogue as (sum(p)+sum(t)) - intersection.
        fold_into(acc_prod, p * t)
        fold_into(acc_sum, p + t)

    if not any_ragged:
        accumulate(pred_ref[...].astype(jnp.float32),
                   tgt_ref[...].astype(jnp.float32))
    else:
        # Masking is kept out of the steady state: full tiles take the
        # unmasked path; only ragged / fully out-of-range tiles pay for it.
        g = si * k_per_split + k              # unclamped global row-tile index
        row_start = g * rows_tile
        tile_is_full = row_start + rows_tile <= rows_total

        @pl.when(tile_is_full)
        def _():
            accumulate(pred_ref[...].astype(jnp.float32),
                       tgt_ref[...].astype(jnp.float32))

        @pl.when(jnp.logical_not(tile_is_full))
        def _():
            rows_left = rows_total - row_start      # <= 0 for clamped steps
            row_ids = lax.broadcasted_iota(
                jnp.int32, (batch_tile, rows_tile, _LANES), 1)
            valid = row_ids < rows_left
            p = jnp.where(valid, pred_ref[...].astype(jnp.float32), 0.0)
            t = jnp.where(valid, tgt_ref[...].astype(jnp.float32), 0.0)
            accumulate(p, t)

    @pl.when(k == pl.num_programs(2) - 1)
    def _():
        # One sublane (XLU) reduce per output block -- not per step -- then a
        # lane-dense (batch_tile, 2, 128) output write.  The final lane
        # reduction happens in the tiny JAX epilogue.
        out_ref[:, 0:1, :] = jnp.sum(acc_prod[...], axis=1, keepdims=True)
        out_ref[:, 1:2, :] = jnp.sum(acc_sum[...], axis=1, keepdims=True)


# ---------------------------------------------------------------------------
# pallas_call wrapper: tiling / grid selection + epilogue reduction.
# ---------------------------------------------------------------------------
def _iou_partial_sums(pred3, tgt3, *, target_block_bytes):
    """pred3/tgt3: (B, r, 128).  Returns (B, 2) f32: [sum(p*t), sum(p)+sum(t)]."""
    b, r, lanes = pred3.shape
    assert lanes == _LANES

    itemsize = max(jnp.dtype(pred3.dtype).itemsize,
                   jnp.dtype(tgt3.dtype).itemsize)
    # ~1 MiB per input per block regardless of dtype (2048 rows f32, 4096 bf16).
    target_rows = max(_SUBLANES, target_block_bytes // (itemsize * _LANES))

    if r >= target_rows:
        rows_tile = (target_rows // _SUBLANES) * _SUBLANES   # multiple of 8
        batch_tile = 1
    else:
        rows_tile = r                                        # full row dim
        batch_tile = int(min(b, max(1, target_rows // max(r, _SUBLANES))))

    nb = -(-b // batch_tile)                                 # batch blocks
    num_k_total = -(-r // rows_tile)                         # row tiles overall
    # With a single batch block, split the row axis across 2 parallel chunks so
    # both v7x TensorCores get work (harmless extra loop level on 1-TC chips).
    num_splits = 2 if (nb < 2 and num_k_total >= 2) else 1
    k_per_split = -(-num_k_total // num_splits)
    any_ragged = num_splits * k_per_split * rows_tile > r
    clamp = num_splits * k_per_split > num_k_total

    b_pad = nb * batch_tile
    out_rows = num_splits * b_pad

    kernel = functools.partial(
        _iou_partials_kernel,
        rows_total=r, rows_tile=rows_tile, k_per_split=k_per_split,
        batch_tile=batch_tile, any_ragged=any_ragged)

    def in_map(bi, si, k):
        g = si * k_per_split + k
        if clamp:                                  # keep the DMA in-bounds;
            g = jnp.minimum(g, num_k_total - 1)    # kernel masks these to zero
        return (bi, g, 0)

    def out_map(bi, si, k):
        return (si * nb + bi, 0, 0)

    in_bytes = b * r * _LANES * (jnp.dtype(pred3.dtype).itemsize
                                 + jnp.dtype(tgt3.dtype).itemsize)
    cost = pl.CostEstimate(
        flops=5 * b * r * _LANES,
        transcendentals=0,
        bytes_accessed=in_bytes + out_rows * 2 * _LANES * 4)

    partials = pl.pallas_call(
        kernel,
        out_shape=jax.ShapeDtypeStruct((out_rows, 2, _LANES), jnp.float32),
        grid_spec=pltpu.PrefetchScalarGridSpec(
            num_scalar_prefetch=0,
            grid=(nb, num_splits, k_per_split),
            in_specs=[
                pl.BlockSpec((batch_tile, rows_tile, _LANES), in_map),
                pl.BlockSpec((batch_tile, rows_tile, _LANES), in_map),
            ],
            out_specs=pl.BlockSpec((batch_tile, 2, _LANES), out_map),
            scratch_shapes=[
                pltpu.VMEM((batch_tile, _SUBLANES, _LANES), jnp.float32),
                pltpu.VMEM((batch_tile, _SUBLANES, _LANES), jnp.float32),
            ],
        ),
        compiler_params=pltpu.CompilerParams(
            dimension_semantics=("parallel", "parallel", "arbitrary")),
        cost_estimate=cost,
    )(pred3, tgt3)

    # (num_splits, b_pad, 2, 128): drop padded batch rows, reduce splits+lanes.
    partials = partials.reshape(num_splits, b_pad, 2, _LANES)[:, :b]
    return jnp.sum(partials, axis=(0, 3))                    # (B, 2)


# ---------------------------------------------------------------------------
# Public wrapper: matches IoULoss.forward semantics.
# ---------------------------------------------------------------------------
def iou_loss(pred, target, smooth: float = 1.0,
             target_block_bytes: int = 1 << 20):
    assert pred.shape == target.shape
    b = pred.shape[0]
    n = math.prod(pred.shape[1:]) if pred.ndim > 1 else 1

    pred_flat = pred.reshape(b, n)
    tgt_flat = target.reshape(b, n)

    r = n // _LANES
    rem = n - r * _LANES

    if r > 0:
        if rem == 0:
            main_p, main_t = pred_flat, tgt_flat
        else:
            # Lane-dense prefix; the <=127-element remainder is handled below.
            main_p = pred_flat[:, : r * _LANES]
            main_t = tgt_flat[:, : r * _LANES]
        sums = _iou_partial_sums(main_p.reshape(b, r, _LANES),
                                 main_t.reshape(b, r, _LANES),
                                 target_block_bytes=target_block_bytes)
        inter = sums[:, 0]
        both = sums[:, 1]
    else:
        # Degenerate N < 128: the whole input is the "remainder" below.
        inter = jnp.zeros((b,), jnp.float32)
        both = jnp.zeros((b,), jnp.float32)

    if rem:
        pr = pred_flat[:, r * _LANES:].astype(jnp.float32)
        tr = tgt_flat[:, r * _LANES:].astype(jnp.float32)
        inter = inter + jnp.sum(pr * tr, axis=1)
        both = both + jnp.sum(pr + tr, axis=1)

    union = both - inter
    iou = (inter + smooth) / (union + smooth)
    return jnp.mean(1.0 - iou)


def iou_loss_ref(pred, target, smooth: float = 1.0):
    b = pred.shape[0]
    p = pred.reshape(b, -1).astype(jnp.float32)
    t = target.reshape(b, -1).astype(jnp.float32)
    inter = jnp.sum(p * t, axis=1)
    union = jnp.sum(p, axis=1) + jnp.sum(t, axis=1) - inter
    iou = (inter + smooth) / (union + smooth)
    return jnp.mean(1.0 - iou)


if __name__ == "__main__":
    key = jax.random.PRNGKey(0)
    keys = jax.random.split(key, 12)

    def check(pred, target, msg, **kw):
        got = jax.block_until_ready(iou_loss(pred, target, smooth=1.0, **kw))
        want = jax.block_until_ready(iou_loss_ref(pred, target, smooth=1.0))
        assert jnp.allclose(got, want, atol=1e-4, rtol=1e-4), (msg, got, want)

    # 1) Basic small segmentation batch: (B, C, H, W) = (2, 4, 16, 16), N=1024.
    pred = jax.nn.sigmoid(jax.random.normal(keys[0], (2, 4, 16, 16), jnp.float32))
    tgt = (jax.random.uniform(keys[1], (2, 4, 16, 16)) > 0.5).astype(jnp.float32)
    check(pred, tgt, "basic")

    # 2) Multi-step row reduction with a ragged (masked) last tile (r=18, tile=8).
    p2 = jax.nn.sigmoid(jax.random.normal(keys[2], (2, 9, 16, 16), jnp.float32))
    t2 = (jax.random.uniform(keys[3], (2, 9, 16, 16)) > 0.5).astype(jnp.float32)
    check(p2, t2, "ragged rows", target_block_bytes=8 * 128 * 4)

    # 3) B=1 -> row axis split into 2 parallel chunks (v7x dual-TC path),
    #    including clamped fully-out-of-range tail steps.
    p3 = jax.nn.sigmoid(jax.random.normal(keys[4], (1, 9, 16, 16), jnp.float32))
    t3 = (jax.random.uniform(keys[5], (1, 9, 16, 16)) > 0.5).astype(jnp.float32)
    check(p3, t3, "row split", target_block_bytes=8 * 128 * 4)

    # 4) Row count not a multiple of 8 (tail accumulation path): r = 10.
    p4 = jax.nn.sigmoid(jax.random.normal(keys[6], (2, 10, 8, 16), jnp.float32))
    t4 = (jax.random.uniform(keys[7], (2, 10, 8, 16)) > 0.5).astype(jnp.float32)
    check(p4, t4, "tail rows")

    # 5) bf16 inputs (half the HBM bytes; accumulation stays f32 in-kernel).
    check(pred.astype(jnp.bfloat16), tgt.astype(jnp.bfloat16), "bf16")

    # 6) N % 128 != 0: lane-dense prefix kernel + tiny JAX remainder epilogue.
    p6 = jax.nn.sigmoid(jax.random.normal(keys[8], (2, 3, 10, 10), jnp.float32))
    t6 = (jax.random.uniform(keys[9], (2, 3, 10, 10)) > 0.5).astype(jnp.float32)
    check(p6, t6, "remainder")

    # 7) Multiple batches fused per grid step with a ragged last batch block
    #    (B=5, batch_tile=2 -> 3 batch blocks, last one half valid).
    p7 = jax.nn.sigmoid(jax.random.normal(keys[10], (5, 4, 16, 16), jnp.float32))
    t7 = (jax.random.uniform(keys[11], (5, 4, 16, 16)) > 0.5).astype(jnp.float32)
    check(p7, t7, "ragged batch", target_block_bytes=2 * 8 * 128 * 4)

    print("KERNEL_OK")
</pallas_src>

<mosaic_0001>
module attributes {stable_mosaic.version = 11 : i64} {
  func.func @_iou_partials_kernel(%arg0: i32, %arg1: i32, %arg2: i32, %arg3: memref<2x8x128xf32, #tpu.memory_space<vmem>>, %arg4: memref<2x8x128xf32, #tpu.memory_space<vmem>>, %arg5: memref<2x2x128xf32, #tpu.memory_space<vmem>>, %arg6: memref<2x8x128xf32, #tpu.memory_space<vmem>>, %arg7: memref<2x8x128xf32, #tpu.memory_space<vmem>>) attributes {dimension_semantics = [#tpu.dimension_semantics<parallel>, #tpu.dimension_semantics<parallel>, #tpu.dimension_semantics<arbitrary>], iteration_bounds = array<i64: 1, 1, 1>, scalar_prefetch = 0 : i64, scratch_operands = 2 : i64, tpu.core_type = #tpu.core_type<tc>, window_params = [{transform_indices = @transform_0, window_bounds = array<i64: 2, 8, 128>}, {transform_indices = @transform_1, window_bounds = array<i64: 2, 8, 128>}, {transform_indices = @transform_2, window_bounds = array<i64: 2, 2, 128>}]} {
    %c0_i32 = arith.constant 0 : i32
    %0 = arith.cmpi eq, %arg2, %c0_i32 : i32
    %1 = arith.extui %0 : i1 to i32
    %c0_i32_0 = arith.constant 0 : i32
    %2 = arith.cmpi ne, %1, %c0_i32_0 : i32
    scf.if %2 {
      %cst_21 = arith.constant 0.000000e+00 : f32
      %20 = vector.broadcast %cst_21 : f32 to vector<2x8x128xf32>
      %c0_22 = arith.constant 0 : index
      %c0_23 = arith.constant 0 : index
      %c0_24 = arith.constant 0 : index
      %21 = vector.load %arg6[%c0_22, %c0_23, %c0_24] : memref<2x8x128xf32, #tpu.memory_space<vmem>>, vector<2x8x128xf32>
      tpu.vector_store %arg6[%c0_22, %c0_23, %c0_24], %20 {strides = array<i32>} : memref<2x8x128xf32, #tpu.memory_space<vmem>>, vector<2x8x128xf32>,
      %cst_25 = arith.constant 0.000000e+00 : f32
      %22 = vector.broadcast %cst_25 : f32 to vector<2x8x128xf32>
      %c0_26 = arith.constant 0 : index
      %c0_27 = arith.constant 0 : index
      %c0_28 = arith.constant 0 : index
      %23 = vector.load %arg7[%c0_26, %c0_27, %c0_28] : memref<2x8x128xf32, #tpu.memory_space<vmem>>, vector<2x8x128xf32>
      tpu.vector_store %arg7[%c0_26, %c0_27, %c0_28], %22 {strides = array<i32>} : memref<2x8x128xf32, #tpu.memory_space<vmem>>, vector<2x8x128xf32>,
    } else {
    }
    %c0 = arith.constant 0 : index
    %c0_1 = arith.constant 0 : index
    %c0_2 = arith.constant 0 : index
    %3 = vector.load %arg3[%c0, %c0_1, %c0_2] : memref<2x8x128xf32, #tpu.memory_space<vmem>>, vector<2x8x128xf32>
    %c0_3 = arith.constant 0 : index
    %c0_4 = arith.constant 0 : index
    %c0_5 = arith.constant 0 : index
    %4 = vector.load %arg4[%c0_3, %c0_4, %c0_5] : memref<2x8x128xf32, #tpu.memory_space<vmem>>, vector<2x8x128xf32>
    %5 = arith.mulf %3, %4 : vector<2x8x128xf32>
    %c0_6 = arith.constant 0 : index
    %c0_7 = arith.constant 0 : index
    %c0_8 = arith.constant 0 : index
    %6 = vector.load %arg6[%c0_6, %c0_7, %c0_8] : memref<2x8x128xf32, #tpu.memory_space<vmem>>, vector<2x8x128xf32>
    %7 = vector.shape_cast %5 : vector<2x8x128xf32> to vector<2x1x8x128xf32>
    %cst = arith.constant dense<0.000000e+00> : vector<2x8x128xf32>
    %8 = vector.multi_reduction <add>, %7, %cst [1] : vector<2x1x8x128xf32> to vector<2x8x128xf32>
    %9 = arith.addf %6, %8 : vector<2x8x128xf32>
    %c0_9 = arith.constant 0 : index
    %c0_10 = arith.constant 0 : index
    %c0_11 = arith.constant 0 : index
    %10 = vector.load %arg6[%c0_9, %c0_10, %c0_11] : memref<2x8x128xf32, #tpu.memory_space<vmem>>, vector<2x8x128xf32>
    tpu.vector_store %arg6[%c0_9, %c0_10, %c0_11], %9 {strides = array<i32>} : memref<2x8x128xf32, #tpu.memory_space<vmem>>, vector<2x8x128xf32>,
    %11 = arith.addf %3, %4 : vector<2x8x128xf32>
    %c0_12 = arith.constant 0 : index
    %c0_13 = arith.constant 0 : index
    %c0_14 = arith.constant 0 : index
    %12 = vector.load %arg7[%c0_12, %c0_13, %c0_14] : memref<2x8x128xf32, #tpu.memory_space<vmem>>, vector<2x8x128xf32>
    %13 = vector.shape_cast %11 : vector<2x8x128xf32> to vector<2x1x8x128xf32>
    %cst_15 = arith.constant dense<0.000000e+00> : vector<2x8x128xf32>
    %14 = vector.multi_reduction <add>, %13, %cst_15 [1] : vector<2x1x8x128xf32> to vector<2x8x128xf32>
    %15 = arith.addf %12, %14 : vector<2x8x128xf32>
    %c0_16 = arith.constant 0 : index
    %c0_17 = arith.constant 0 : index
    %c0_18 = arith.constant 0 : index
    %16 = vector.load %arg7[%c0_16, %c0_17, %c0_18] : memref<2x8x128xf32, #tpu.memory_space<vmem>>, vector<2x8x128xf32>
    tpu.vector_store %arg7[%c0_16, %c0_17, %c0_18], %15 {strides = array<i32>} : memref<2x8x128xf32, #tpu.memory_space<vmem>>, vector<2x8x128xf32>,
    %c0_i32_19 = arith.constant 0 : i32
    %17 = arith.cmpi eq, %arg2, %c0_i32_19 : i32
    %18 = arith.extui %17 : i1 to i32
    %c0_i32_20 = arith.constant 0 : i32
    %19 = arith.cmpi ne, %18, %c0_i32_20 : i32
    scf.if %19 {
      %c0_21 = arith.constant 0 : index
      %c0_22 = arith.constant 0 : index
      %c0_23 = arith.constant 0 : index
      %20 = vector.load %arg6[%c0_21, %c0_22, %c0_23] : memref<2x8x128xf32, #tpu.memory_space<vmem>>, vector<2x8x128xf32>
      %cst_24 = arith.constant dense<0.000000e+00> : vector<2x128xf32>
      %21 = vector.multi_reduction <add>, %20, %cst_24 [1] : vector<2x8x128xf32> to vector<2x128xf32>
      %22 = vector.shape_cast %21 : vector<2x128xf32> to vector<2x1x128xf32>
      %c0_25 = arith.constant 0 : index
      %c0_26 = arith.constant 0 : index
      %c0_27 = arith.constant 0 : index
      %23 = vector.load %arg5[%c0_25, %c0_26, %c0_27] : memref<2x2x128xf32, #tpu.memory_space<vmem>>, vector<2x1x128xf32>
      tpu.vector_store %arg5[%c0_25, %c0_26, %c0_27], %22 {strides = array<i32>} : memref<2x2x128xf32, #tpu.memory_space<vmem>>, vector<2x1x128xf32>,
      %c0_28 = arith.constant 0 : index
      %c0_29 = arith.constant 0 : index
      %c0_30 = arith.constant 0 : index
      %24 = vector.load %arg7[%c0_28, %c0_29, %c0_30] : memref<2x8x128xf32, #tpu.memory_space<vmem>>, vector<2x8x128xf32>
      %cst_31 = arith.constant dense<0.000000e+00> : vector<2x128xf32>
      %25 = vector.multi_reduction <add>, %24, %cst_31 [1] : vector<2x8x128xf32> to vector<2x128xf32>
      %26 = vector.shape_cast %25 : vector<2x128xf32> to vector<2x1x128xf32>
      %c0_32 = arith.constant 0 : index
      %c1 = arith.constant 1 : index
      %c0_33 = arith.constant 0 : index
      %27 = vector.load %arg5[%c0_32, %c1, %c0_33] : memref<2x2x128xf32, #tpu.memory_space<vmem>>, vector<2x1x128xf32>
      tpu.vector_store %arg5[%c0_32, %c1, %c0_33], %26 {strides = array<i32>} : memref<2x2x128xf32, #tpu.memory_space<vmem>>, vector<2x1x128xf32>,
    } else {
    }
    return
  }
  func.func @transform_0(%arg0: i32, %arg1: i32, %arg2: i32) -> (i32, i32, i32) {
    %c1_i32 = arith.constant 1 : i32
    %0 = arith.muli %arg1, %c1_i32 : i32
    %1 = arith.addi %0, %arg2 : i32
    %c0_i32 = arith.constant 0 : i32
    %c0_i32_0 = arith.constant 0 : i32
    return %arg0, %1, %c0_i32 : i32, i32, i32
  }
  func.func @transform_1(%arg0: i32, %arg1: i32, %arg2: i32) -> (i32, i32, i32) {
    %c1_i32 = arith.constant 1 : i32
    %0 = arith.muli %arg1, %c1_i32 : i32
    %1 = arith.addi %0, %arg2 : i32
    %c0_i32 = arith.constant 0 : i32
    %c0_i32_0 = arith.constant 0 : i32
    return %arg0, %1, %c0_i32 : i32, i32, i32
  }
  func.func @transform_2(%arg0: i32, %arg1: i32, %arg2: i32) -> (i32, i32, i32) {
    %c1_i32 = arith.constant 1 : i32
    %0 = arith.muli %arg1, %c1_i32 : i32
    %1 = arith.addi %0, %arg0 : i32
    %c0_i32 = arith.constant 0 : i32
    %c0_i32_0 = arith.constant 0 : i32
    %c0_i32_1 = arith.constant 0 : i32
    return %1, %c0_i32, %c0_i32_0 : i32, i32, i32
  }
}

</mosaic_0001>

<bundles_post_ra>
// kernel: tpu_custom_call.1
= control target key start
LH: loop header
LB: loop body
LE: loop exit
PB: predicated region body
PF: predicated region fallthrough
CT: control target
= control target key end

     0   :  { %7 = vsyncpa [#allocation5], 0  ;;  %s276_s0 = inlined_call_operand.hbm [shape: f32[2,8,128], index: 0, kind: input, shape index: {}]   ;;  %s277_s1 = inlined_call_operand.hbm [shape: f32[2,8,128], index: 1, kind: input, shape index: {}]   ;;  %s278_s2 = inlined_call_operand.hbm [shape: f32[2,2,128], index: 2, kind: output, shape index: {}]  }
   0x1   :  { %8 = vsyncpa [#allocation8], 0 }
   0x2   :  { %9 = vsyncpa [#allocation6], 0  ;;  %s218_s9 = smov [#allocation4]   ;;  %s146_s13 = scalar_lea.hbm %s276_s0, 256 }
   0x3   :  { %s18_s10 = sshll.u32 %s218_s9, 4  ;;  %p147_p0 = scmp.ne.s32.totalorder %s276_s0, %s146_s13  ;;  %s19_s10 = int_to_ptr.vmem [resolvable:$true] %s18_s10 }
   0x4   :  { %p150_p1 = scmp.lt.u32.totalorder %s146_s13, %s276_s0 }
   0x6   :  { %p152_p2 = pnand %p150_p1, %p147_p0 }
   0x8   :  { %155 = shalt.err (!%p152_p2)
}
   0x9   :  { %s156_s18 = scalar_lea.vmem %s19_s10, 256  ;;  %p161_p4 = scmp.lt.s32.totalorder %s19_s10, %s19_s10 }
   0xa   :  { %p157_p3 = scmp.ne.s32.totalorder %s19_s10, %s156_s18  ;;  %p162_p5 = scmp.lt.s32.totalorder %s156_s18, %s156_s18 }
   0xc   :  { %p163_p6 = por %p162_p5, %p161_p4 }
   0xe   :  { %p164_p7 = pnand %p163_p6, %p157_p3 }
  0x10   :  { %167 = shalt.err (!%p164_p7)
}
  0x11   :  { %s219_s19 = smov 128   ;;  %s220_s20 = smov 8  }
  0x12   :  { %24 = dma.hbm_to_vmem [thread:$0]  %s276_s0, 256, %s19_s10, [#allocation5], %s219_s19, %s219_s19, %s220_s20  }
  0x13   :  { %s221_s23 = smov [#allocation7]   ;;  %s168_s27 = scalar_lea.hbm %s277_s1, 256 }
  0x14   :  { %s33_s24 = sshll.u32 %s221_s23, 4  ;;  %p169_p8 = scmp.ne.s32.totalorder %s277_s1, %s168_s27  ;;  %s34_s24 = int_to_ptr.vmem [resolvable:$true] %s33_s24 }
  0x15   :  { %p172_p9 = scmp.lt.u32.totalorder %s168_s27, %s277_s1 }
  0x17   :  { %p174_p10 = pnand %p172_p9, %p169_p8 }
  0x19   :  { %177 = shalt.err (!%p174_p10)
}
  0x1a   :  { %s178_s4 = scalar_lea.vmem %s34_s24, 256  ;;  %p183_p12 = scmp.lt.s32.totalorder %s34_s24, %s34_s24 }
  0x1b   :  { %p179_p11 = scmp.ne.s32.totalorder %s34_s24, %s178_s4  ;;  %p184_p13 = scmp.lt.s32.totalorder %s178_s4, %s178_s4 }
  0x1d   :  { %p185_p0 = por %p184_p13, %p183_p12 }
  0x1f   :  { %p186_p1 = pnand %p185_p0, %p179_p11 }
  0x21   :  { %189 = shalt.err (!%p186_p1)
}
  0x22   :  { %39 = dma.hbm_to_vmem [thread:$0]  %s277_s1, 256, %s34_s24, [#allocation8], %s219_s19, %s219_s19, %s220_s20  }
  0x23   :  { %212 = dma.done.wait [#allocation5], 256  }
  0x24   :  { %213 = vsyncadd [#allocation5], 4294967040 }
  0x25   :  { %214 = dma.done.wait [#allocation8], 256  }
  0x26   :  { %215 = vsyncadd [#allocation8], 4294967040  ;;  %v58_v0 = vld [vmem:[#allocation4] sm:$0xff]  ;;  %v60_v1 = vld [vmem:[#allocation7] sm:$0xff]  ;;  %s222_s1 = smov [#allocation9]  }
  0x27   :  { %v59_v2 = vld [vmem:[#allocation4 + $0x8] sm:$0xff]  ;;  %v62_v3 = vmul.f32 %v60_v1, %v58_v0  ;;  %v61_v4 = vld [vmem:[#allocation7 + $0x8] sm:$0xff]  ;;  %v72_v5 = vadd.f32 %v60_v1, %v58_v0  ;;  %s126_s6 = sshll.u32 %s222_s1, 4  ;;  %s127_s6 = int_to_ptr.vmem [resolvable:$true] %s126_s6 }
  0x28   :  { %v63_v6 = vmul.f32 %v61_v4, %v59_v2  ;;  %v73_v7 = vadd.f32 %v61_v4, %v59_v2  ;;  %s190_s7 = scalar_lea.vmem %s127_s6, 64  ;;  %p195_p3 = scmp.lt.s32.totalorder %s127_s6, %s127_s6 }
  0x29   :  { %v87_v8 = vrot.slane %v62_v3, 4  ;;  %v103_v9 = vrot.slane %v72_v5, 4  ;;  %p191_p2 = scmp.ne.s32.totalorder %s127_s6, %s190_s7  ;;  %p196_p4 = scmp.lt.s32.totalorder %s190_s7, %s190_s7 }
  0x2a   :  { %v93_v10 = vrot.slane %v63_v6, 4  ;;  %v109_v11 = vrot.slane %v73_v7, 4 }
  0x2b   :  { %v88_v12 = vadd.f32 %v87_v8, %v62_v3  ;;  %v104_v13 = vadd.f32 %v103_v9, %v72_v5  ;;  %p197_p5 = por %p196_p4, %p195_p3 }
  0x2c   :  { %v94_v14 = vadd.f32 %v93_v10, %v63_v6  ;;  %v110_v15 = vadd.f32 %v109_v11, %v73_v7 }
  0x2d   :  { %v89_v16 = vrot.slane %v88_v12, 2  ;;  %v105_v17 = vrot.slane %v104_v13, 2  ;;  %p198_p6 = pnand %p197_p5, %p191_p2 }
  0x2e   :  { %v95_v18 = vrot.slane %v94_v14, 2  ;;  %v111_v19 = vrot.slane %v110_v15, 2 }
  0x2f   :  { %v90_v20 = vadd.f32 %v89_v16, %v88_v12  ;;  %v106_v21 = vadd.f32 %v105_v17, %v104_v13 }
  0x30   :  { %v96_v22 = vadd.f32 %v95_v18, %v94_v14  ;;  %v112_v23 = vadd.f32 %v111_v19, %v110_v15 }
  0x31   :  { %v91_v24 = vrot.slane %v90_v20, 1  ;;  %v107_v25 = vrot.slane %v106_v21, 1 }
  0x32   :  { %v97_v26 = vrot.slane %v96_v22, 1  ;;  %v113_v27 = vrot.slane %v112_v23, 1 }
  0x33   :  { %v92_v28 = vadd.f32 %v91_v24, %v90_v20  ;;  %v108_v29 = vadd.f32 %v107_v25, %v106_v21 }
  0x34   :  { %v98_v30 = vadd.f32 %v97_v26, %v96_v22  ;;  %v114_v31 = vadd.f32 %v113_v27, %v112_v23 }
  0x35   :  { %99 = vst [vmem:[#allocation9] sm:$0x1] %v92_v28  ;;  %115 = vst [vmem:[#allocation9 + $0x1] sm:$0x1] %v108_v29 }
  0x36   :  { %100 = vst [vmem:[#allocation9 + $0x2] sm:$0x1] %v98_v30  ;;  %116 = vst [vmem:[#allocation9 + $0x3] sm:$0x1] %v114_v31 }
  0x37   :  { %201 = shalt.err (!%p198_p6)
}
  0x38   :  { %s202_s10 = scalar_lea.hbm %s278_s2, 64 }
  0x39   :  { %p203_p7 = scmp.ne.s32.totalorder %s278_s2, %s202_s10  ;;  %p206_p8 = scmp.lt.u32.totalorder %s202_s10, %s278_s2 }
  0x3b   :  { %p208_p9 = pnand %p206_p8, %p203_p7 }
  0x3d   :  { %211 = shalt.err (!%p208_p9)
}
  0x3e   :  { %s223_s15 = smov 32   ;;  %s224_s16 = smov 2  }
  0x3f   :  { %132 = dma.vmem_to_hbm [thread:$0]  %s127_s6, 64, %s278_s2, [#allocation6], %s223_s15, %s223_s15, %s224_s16  }
  0x40   :  { %216 = dma.done.wait [#allocation6], 64  }
  0x41   :  { %217 = vsyncadd [#allocation6], 4294967232 }
  0x42   :  { %136 = vsyncpa [#allocation5], 1 }
  0x43   :  { %137 = vsyncpa [#allocation8], 1 }
  0x44   :  { %138 = vsyncpa [#allocation6], 1 }

</bundles_post_ra>
